<compile_context>
chip_gen: v5e
topology: v5e:2x2
jax: 0.10.0
libtpu: 0.0.40
codegen_flags: <defaults>
</compile_context>

<pallas_src>
import functools
import math

import jax
import jax.numpy as jnp
from jax.experimental import pallas as pl
from jax.experimental.pallas import tpu as pltpu


def _round_up(v, m):
    return ((v + m - 1) // m) * m


def _vmem_budget_and_limit():
    """Generation-aware per-step tile budget and Mosaic scoped-VMEM limit."""
    cap = None
    try:
        info = pltpu.get_tpu_info()
        cap = getattr(info, "vmem_capacity_bytes", None)
    except Exception:
        cap = None
    if not cap:
        cap = 64 * 1024 * 1024                      # conservative: v7x per-TC VMEM
    budget = max(16 * 1024 * 1024, cap // 4)        # tile data (double-buffered)
    limit = max(32 * 1024 * 1024, cap // 2)         # Mosaic scoped VMEM limit
    return int(budget), int(limit)


# ----------------------------------------------------------------------------
# Kernels
# ----------------------------------------------------------------------------
def _rbf_dense_kernel(x_ref, c_ref, e_ref, o_ref, *, neg_gamma):
    # x_ref: (TB, K)   - K consecutive x values per dense row
    # c_ref: (1, KC)   - centers tiled K times
    # e_ref: (K, KC)   - 0/1 indicator, column k*C+j selects x[:, k]
    # o_ref: (TB, KC)  - lane-dense output block (KC is a multiple of 128)
    xe = jnp.dot(x_ref[...], e_ref[...],
                 precision=jax.lax.Precision.HIGHEST,   # exact 0/1 selection
                 preferred_element_type=jnp.float32)    # (TB, KC), MXU is idle
    d = xe - c_ref[...]
    o_ref[...] = jnp.exp(neg_gamma * (d * d))


def _rbf_rowmajor_kernel(x_ref, c_ref, o_ref, *, neg_gamma):
    # x_ref: (TN, 1), c_ref: (1, TC), o_ref: (TN, TC)
    d = x_ref[...] - c_ref[...]
    o_ref[...] = jnp.exp(neg_gamma * (d * d))


# ----------------------------------------------------------------------------
# Wrappers
# ----------------------------------------------------------------------------
def _rbf_dense(x_flat, c_vec, neg_gamma, k, kc, vmem_budget, vmem_limit, row_tile):
    n = x_flat.shape[0]
    c = c_vec.shape[0]
    nb = n // k

    x2 = jnp.reshape(x_flat, (nb, k))                              # 4*K-byte rows
    c_dense = jnp.tile(c_vec, k).reshape(1, kc)                    # (1, KC)
    e = jnp.repeat(jnp.eye(k, dtype=jnp.float32), c, axis=1)       # (K, KC) 0/1

    # VMEM accounting (double-buffered):
    #   E        : 2 * 4 * K * KC           (constant block index -> DMA'd once)
    #   centers  : 2 * 4 * 8 * KC           (1 row sublane-pads to 8)
    #   x block  : 2 * 4 * 128 * TB         (K <= 128 lane-pads to 128)
    #   out block: 2 * 4 * KC * TB
    fixed = 2 * 4 * (k * kc + 8 * kc)
    per_row = 2 * 4 * (128 + kc)
    budget_rows = max(8, ((max(vmem_budget - fixed, 8 * per_row) // per_row) // 8) * 8)
    if row_tile is not None:
        budget_rows = max(8, min(budget_rows, _round_up(int(row_tile), 8)))
    # Keep >= 2 row blocks when there is enough work (v7x megacore).
    if nb >= 16:
        budget_rows = min(budget_rows, _round_up(pl.cdiv(nb, 2), 8))
    tb = nb if nb <= budget_rows else budget_rows

    grid = (pl.cdiv(nb, tb),)                   # ragged last block is masked

    cost = pl.CostEstimate(
        flops=3 * n * c + 2 * nb * k * kc,      # sub/mul/mul + indicator matmul
        transcendentals=n * c,
        bytes_accessed=4 * (n * c + n + k * kc + kc),
    )

    out = pl.pallas_call(
        functools.partial(_rbf_dense_kernel, neg_gamma=neg_gamma),
        out_shape=jax.ShapeDtypeStruct((nb, kc), jnp.float32),
        grid_spec=pltpu.PrefetchScalarGridSpec(
            num_scalar_prefetch=0,
            grid=grid,
            in_specs=[
                pl.BlockSpec((tb, k), lambda i: (i, 0)),    # x rows
                pl.BlockSpec((1, kc), lambda i: (0, 0)),    # tiled centers (resident)
                pl.BlockSpec((k, kc), lambda i: (0, 0)),    # indicator matrix (resident)
            ],
            out_specs=pl.BlockSpec((tb, kc), lambda i: (i, 0)),
        ),
        compiler_params=pltpu.CompilerParams(
            dimension_semantics=("parallel",),
            vmem_limit_bytes=vmem_limit,
        ),
        cost_estimate=cost,
    )(x2, c_dense, e)

    # (NB, K*C) -> (N, C): contiguous row-major reshape, no data movement.
    return out.reshape(n, c)


def _rbf_rowmajor(x_flat, c_vec, neg_gamma, vmem_budget, vmem_limit, row_tile):
    n = x_flat.shape[0]
    c = c_vec.shape[0]
    x_col = jnp.reshape(x_flat, (n, 1))
    c_row = jnp.reshape(c_vec, (1, c))

    center_tile = 512
    if c <= center_tile:
        tc = c                                   # full dim: allowed even if not %128
    else:
        tc = max(128, (center_tile // 128) * 128)
    cpad = _round_up(max(tc, 1), 128)

    budget_rows = vmem_budget // (2 * 4 * (128 + cpad))
    budget_rows = max(8, (budget_rows // 8) * 8)
    if row_tile is not None:
        budget_rows = max(8, min(budget_rows, _round_up(int(row_tile), 8)))
    if n >= 16:
        budget_rows = min(budget_rows, max(8, _round_up(pl.cdiv(n, 2), 8)))
    tn = n if n <= budget_rows else budget_rows

    grid = (pl.cdiv(n, tn), pl.cdiv(c, tc))      # ragged blocks are masked

    cost = pl.CostEstimate(
        flops=3 * n * c,
        transcendentals=n * c,
        bytes_accessed=4 * (n * c + n + c),
    )

    return pl.pallas_call(
        functools.partial(_rbf_rowmajor_kernel, neg_gamma=neg_gamma),
        out_shape=jax.ShapeDtypeStruct((n, c), jnp.float32),
        grid_spec=pltpu.PrefetchScalarGridSpec(
            num_scalar_prefetch=0,
            grid=grid,
            in_specs=[
                pl.BlockSpec((tn, 1), lambda i, j: (i, 0)),
                pl.BlockSpec((1, tc), lambda i, j: (0, j)),
            ],
            out_specs=pl.BlockSpec((tn, tc), lambda i, j: (i, j)),
        ),
        compiler_params=pltpu.CompilerParams(
            dimension_semantics=("parallel", "parallel"),
            vmem_limit_bytes=vmem_limit,
        ),
        cost_estimate=cost,
    )(x_col, c_row)


def rbf_forward(x, centers, gamma, *, row_tile=None):
    """Pallas RBF forward: returns (numel(x), n_centers) float32.

    Args:
      x:        any-shaped float array; flattened like the torch module.
      centers:  (C,) float array.
      gamma:    python float (static; distinct gammas recompile).
      row_tile: optional cap on the leading-dim tile (in dense-layout rows for
                the lane-dense path, raw rows for the fallback path).
    """
    x_flat = jnp.reshape(x, (-1,)).astype(jnp.float32)
    c_vec = jnp.reshape(centers, (-1,)).astype(jnp.float32)
    n = x_flat.shape[0]
    c = c_vec.shape[0]
    neg_gamma = -float(gamma)

    vmem_budget, vmem_limit = _vmem_budget_and_limit()

    k = 128 // math.gcd(c, 128)
    kc = k * c                                   # == lcm(C, 128), multiple of 128
    use_dense = (k > 1) and (n >= k) and (n % k == 0) and (kc <= 8192)

    if use_dense:
        return _rbf_dense(x_flat, c_vec, neg_gamma, k, kc,
                          vmem_budget, vmem_limit, row_tile)
    # Fallback (C already a multiple of 128, very large lcm, or N % K != 0).
    return _rbf_rowmajor(x_flat, c_vec, neg_gamma, vmem_budget, vmem_limit, row_tile)


if __name__ == "__main__":
    key = jax.random.PRNGKey(0)

    # Deterministic "module parameters": evenly spaced centers.
    n_centers = 20
    centers = jnp.linspace(0.0, 10.0, n_centers, dtype=jnp.float32)
    gamma = 0.5

    def ref_fn(xx):
        return jnp.exp(-gamma * jnp.square(jnp.reshape(xx, (-1, 1))
                                           - centers.reshape(1, -1)))

    # Main demo: lane-dense path (N = 2048 is a multiple of K = 32).
    x = jax.random.normal(key, (2, 4, 16, 16), dtype=jnp.float32) * 5.0 + 5.0
    y = jax.block_until_ready(rbf_forward(x, centers, gamma))
    assert y.shape == (x.size, n_centers)
    assert jnp.allclose(y, ref_fn(x), atol=1e-6, rtol=1e-6)

    # Dense path with a ragged last row-block (nb=20 rows, tile of 8 -> masked).
    x3 = jax.random.normal(jax.random.PRNGKey(2), (640,), dtype=jnp.float32) * 3.0
    y3 = jax.block_until_ready(rbf_forward(x3, centers, gamma, row_tile=8))
    assert y3.shape == (640, n_centers)
    assert jnp.allclose(y3, ref_fn(x3), atol=1e-6, rtol=1e-6)

    # Fallback path: N = 104 is not a multiple of K = 32 -> row-major kernel,
    # ragged last block masked by Pallas (no pad / no slice).
    x2 = jax.random.normal(jax.random.PRNGKey(1), (104,), dtype=jnp.float32) * 3.0
    y2 = jax.block_until_ready(rbf_forward(x2, centers, gamma, row_tile=32))
    assert y2.shape == (104, n_centers)
    assert jnp.allclose(y2, ref_fn(x2), atol=1e-6, rtol=1e-6)

    print("KERNEL_OK")
</pallas_src>

<mosaic_0001>
module attributes {stable_mosaic.version = 11 : i64} {
  func.func @_rbf_dense_kernel(%arg0: i32, %arg1: memref<32x32xf32, #tpu.memory_space<vmem>>, %arg2: memref<1x640xf32, #tpu.memory_space<vmem>>, %arg3: memref<32x640xf32, #tpu.memory_space<vmem>>, %arg4: memref<32x640xf32, #tpu.memory_space<vmem>>) attributes {dimension_semantics = [#tpu.dimension_semantics<parallel>], iteration_bounds = array<i64: 2>, scalar_prefetch = 0 : i64, scratch_operands = 0 : i64, tpu.core_type = #tpu.core_type<tc>, window_params = [{transform_indices = @transform_0, window_bounds = array<i64: 32, 32>}, {pipeline_mode = #tpu.pipeline_mode<synchronous>, transform_indices = @transform_1, window_bounds = array<i64: 1, 640>}, {pipeline_mode = #tpu.pipeline_mode<synchronous>, transform_indices = @transform_2, window_bounds = array<i64: 32, 640>}, {transform_indices = @transform_3, window_bounds = array<i64: 32, 640>}]} {
    %c0 = arith.constant 0 : index
    %c0_0 = arith.constant 0 : index
    %0 = vector.load %arg1[%c0, %c0_0] : memref<32x32xf32, #tpu.memory_space<vmem>>, vector<32x32xf32>
    %c0_1 = arith.constant 0 : index
    %c0_2 = arith.constant 0 : index
    %1 = vector.load %arg3[%c0_1, %c0_2] : memref<32x640xf32, #tpu.memory_space<vmem>>, vector<32x640xf32>
    %cst = arith.constant dense<0.000000e+00> : vector<32x640xf32>
    %2 = tpu.matmul %0, %1, %cst {dimension_numbers = #tpu.dot_dimension_numbers<[1], [0], [0], [1], [0, 0, 1, 1], [], []>, precision = #tpu.contract_precision<fp32>} : vector<32x32xf32>, vector<32x640xf32>, vector<32x640xf32> -> vector<32x640xf32>
    %c0_3 = arith.constant 0 : index
    %c0_4 = arith.constant 0 : index
    %3 = vector.load %arg2[%c0_3, %c0_4] : memref<1x640xf32, #tpu.memory_space<vmem>>, vector<1x640xf32>
    %4 = vector.broadcast %3 : vector<1x640xf32> to vector<32x640xf32>
    %5 = arith.subf %2, %4 : vector<32x640xf32>
    %6 = arith.mulf %5, %5 : vector<32x640xf32>
    %cst_5 = arith.constant -5.000000e-01 : f32
    %7 = vector.broadcast %cst_5 : f32 to vector<32x640xf32>
    %8 = arith.mulf %7, %6 : vector<32x640xf32>
    %9 = math.exp %8 : vector<32x640xf32>
    %c0_6 = arith.constant 0 : index
    %c0_7 = arith.constant 0 : index
    %10 = vector.load %arg4[%c0_6, %c0_7] : memref<32x640xf32, #tpu.memory_space<vmem>>, vector<32x640xf32>
    tpu.vector_store %arg4[%c0_6, %c0_7], %9 {strides = array<i32>} : memref<32x640xf32, #tpu.memory_space<vmem>>, vector<32x640xf32>,
    return
  }
  func.func @transform_0(%arg0: i32) -> (i32, i32) {
    %c0_i32 = arith.constant 0 : i32
    %c0_i32_0 = arith.constant 0 : i32
    return %arg0, %c0_i32 : i32, i32
  }
  func.func @transform_1(%arg0: i32) -> (i32, i32) {
    %c0_i32 = arith.constant 0 : i32
    %c0_i32_0 = arith.constant 0 : i32
    %c0_i32_1 = arith.constant 0 : i32
    return %c0_i32, %c0_i32_0 : i32, i32
  }
  func.func @transform_2(%arg0: i32) -> (i32, i32) {
    %c0_i32 = arith.constant 0 : i32
    %c0_i32_0 = arith.constant 0 : i32
    %c0_i32_1 = arith.constant 0 : i32
    return %c0_i32, %c0_i32_0 : i32, i32
  }
  func.func @transform_3(%arg0: i32) -> (i32, i32) {
    %c0_i32 = arith.constant 0 : i32
    %c0_i32_0 = arith.constant 0 : i32
    return %arg0, %c0_i32 : i32, i32
  }
}

</mosaic_0001>

<bundles_post_ra>
// kernel: tpu_custom_call.1
= control target key start
LH: loop header
LB: loop body
LE: loop exit
PB: predicated region body
PF: predicated region fallthrough
CT: control target
= control target key end

     0   :  { %8 = vsyncpa [#allocation3], 0  ;;  %s2534_s0 = inlined_call_operand.vmem [shape: f32[64,32], index: 0, kind: input, shape index: {}]   ;;  %s2535_s1 = inlined_call_operand.vmem [shape: f32[1,640], index: 1, kind: input, shape index: {}]   ;;  %s2536_s2 = inlined_call_operand.hbm [shape: f32[32,640], index: 2, kind: input, shape index: {}]   ;;  %s2537_s3 = inlined_call_operand.hbm [shape: f32[64,640], index: 3, kind: output, shape index: {}]  }
   0x1   :  { %9 = vsyncpa [#allocation4], 0 }
   0x2   :  { %11 = vsyncpa [#allocation4 + $0x1], 0  ;;  %s2079_s12 = smov 0   ;;  %s2081_s13 = smov 0  }
   0x3   :  { %s2083_s14 = smov 0   ;;  %s2085_s15 = smov 0  }
   0x4 LB: > { %s2100_s16 = sadd.s32 4294967295, %s2052_s15   ;;  %s1839_s17 = sadd.s32 4294967294, %s2052_s15   ;;  %s2052_s15 = sphi %s2085_s15, %s2543_s15   ;;  %s2048_s14 = sphi %s2083_s14, %s2542_s14   ;;  %s2044_s13 = sphi %s2081_s13, %s2541_s13   ;;  %s2040_s12 = sphi %s2079_s12, %s2540_s12  }
   0x5   : > { %s2104_s18 = sadd.s32 1, %s2052_s15   ;;  %s92_s19 = sadd.s32 1, %s2048_s14 }
   0x6   : > { %s89_s20 = ssub.s32 %s2052_s15, %s2104_s18  ;;  %p102_p0 = scmp.ne.s32.totalorder %s2048_s14, %s2044_s13 }
   0x7   : > { %p90_p1 = scmp.eq.s32.totalorder %s89_s20, 0  ;;  %p103_p2 = scmp.eq.s32.totalorder %s2100_s16, 1 }
   0x8   : > { %p108_p3 = scmp.ne.s32.totalorder %s2044_s13, %s2040_s12  ;;  %p109_p4 = scmp.eq.s32.totalorder %s1839_s17, 1 }
   0x9   : > { %s2115_s21 = scalar_select %p90_p1, %s2048_s14, %s92_s19  }
   0xa   : > { %p2117_p5 = por %p103_p2, %p102_p0  ;;  %p2121_p6 = por %p109_p4, %p108_p3 }
   0xb   : > { %p1840_p7 = scmp.ge.s32.totalorder %s2052_s15, 1  ;;  %p116_p8 = scmp.lt.s32.totalorder %s2052_s15, 3 }
   0xc   : > { %p1876_p9 = scmp.eq.s32.totalorder %s2100_s16, 0  ;;  %s130_s26 = sshll.u32 %s2536_s2, 4  ;;  %s131_s26 = int_to_ptr.hbm [resolvable:$true] %s130_s26 }
   0xd   : > { %p117_p10 = pnand %p1840_p7, %p116_p8  ;;  %s2054_s27 = smov [#allocation2]  }
   0xe   : > { %s132_s28 = sshll.u32 %s2054_s27, 4  ;;  %s2055_s29 = smov 640   ;;  %s133_s28 = int_to_ptr.vmem [resolvable:$true] %s132_s28 }
   0xf   : > { %p1868_p11 = pneg %p117_p10  ;;  %s2056_s30 = smov 40  }
  0x10   : > { %157 = sbr.rel (%p117_p10) target bundleno = 431 (0x1af), region = 32 }
  0x11   : > { %p1869_p12 = pnand %p1876_p9, %p1868_p11 }
  0x13   : > { %1871 = dma.hbm_to_vmem [thread:$0]  (!%p1869_p12), %s131_s26, 2560, %s133_s28, [#allocation3], %s2055_s29, %s2055_s29, %s2056_s30  }
  0x15   : > { %2031 = dma.done.wait (%p1876_p9), [#allocation3], 2560  }
  0x16   : > { %2033 = vsyncadd (%p1876_p9), [#allocation3], 4294964736  ;;  %s1845_s4 = sshll.u32 %s2100_s16, 2  ;;  %vm213_vm0 = vcmask 261120   ;;  %v208_v0 = vld [vmem:[#allocation2 + $0x78] sm:$0xff]  ;;  %v203_v1 = vld [vmem:[#allocation2 + $0x50] sm:$0xff] }
  0x17   : > { %p183_p13 = scmp.lt.s32.totalorder %s1845_s4, 7  ;;  %v198_v2 = vld [vmem:[#allocation2 + $0x28] sm:$0xff]  ;;  %v2143_v3 = vand.u32 4294901760, %v208_v0  ;;  %v2145_v4 = vand.u32 4294901760, %v203_v1  ;;  %v193_v6 = vld [vmem:[#allocation2] sm:$0xff]  ;;  %v204_v37 = vld [vmem:[#allocation2 + $0x58] sm:$0xff] }
  0x18   : > { %v2147_v5 = vand.u32 4294901760, %v198_v2  ;;  %v2151_v9 = vand.u32 4294901760, %v193_v6  ;;  %v209_v17 = vld [vmem:[#allocation2 + $0x80] sm:$0xff]  ;;  %v2212_v47 = vand.u32 4294901760, %v204_v37  ;;  %v199_v53 = vld [vmem:[#allocation2 + $0x30] sm:$0xff]  ;;  %s179_s11 = sand.u32 1, %s2044_s13  }
  0x19   : > { %s2545_s4 = smov (!%p183_p13, %s1845_s4), 7  ;;  %1852 = vmatpush.msra.mxu2 %v2143_v3  ;;  %v292_v13 = vsub.f32 %v208_v0, %v2143_v3  ;;  %v298_v15 = vsub.f32 %v203_v1, %v2145_v4  ;;  %239 = vmatpush.msra.mxu0 %v2143_v3  ;;  %v2181_v29 = vand.u32 4294901760, %v209_v17  ;;  %v2230_v56 = vand.u32 4294901760, %v199_v53  ;;  %s1860_s17 = smul.u32 160, %s179_s11 }
  0x1a   : > { %s1846_s5 = sshll.u32 %s2545_s4, 3  ;;  %v304_v16 = vsub.f32 %v198_v2, %v2147_v5  ;;  %v2164_v18 = vsub.f32 %v193_v6, %v2151_v9  ;;  %v2223_v52 = vsub.f32 %v204_v37, %v2212_v47  ;;  %v194_v2 = vld [vmem:[#allocation2 + $0x8] sm:$0xff]  ;;  %s1861_s20 = smul.u32 160, %s2100_s16 }
  0x1b   : > { %s2141_s8 = scalar_lea.vmem %s2534_s0, %s1846_s5  ;;  %1853 = vmatpush.msra.mxu2 %v2145_v4  ;;  %v293_v21 = vand.u32 4294901760, %v292_v13  ;;  %v299_v23 = vand.u32 4294901760, %v298_v15  ;;  %241 = vmatpush.msra.mxu0 %v2145_v4  ;;  %v2210_v46 = vsub.f32 %v209_v17, %v2181_v29  ;;  %v582_v61 = vsub.f32 %v199_v53, %v2230_v56  ;;  %v206_v53 = vld [vmem:[#allocation2 + $0x68] sm:$0xff]  ;;  %s2406_s19 = scalar_lea.vmem [#allocation5], %s1860_s17 }
  0x1c   : > { %v191_v7 = vld [vmem:[%s2141_s8 + $0x10] sm:$0xff]  ;;  %v192_v8 = vld [vmem:[%s2141_s8 + $0x18] sm:$0xff]  ;;  %v189_v12 = vld [vmem:[%s2141_s8] sm:$0xff]  ;;  %v305_v24 = vand.u32 4294901760, %v304_v16  ;;  %v311_v26 = vand.u32 4294901760, %v2164_v18  ;;  %v577_v60 = vand.u32 4294901760, %v2223_v52  ;;  %s1761_s26 = scalar_lea.hbm %s2537_s3, %s1861_s20 }
  0x1d   : > { %v221_v10 = vsel %vm213_vm0, %v191_v7, 0  ;;  %v224_v11 = vsel %vm213_vm0, %v192_v8, 0  ;;  %v215_v20 = vsel %vm213_vm0, %v189_v12, 0  ;;  %v190_v25 = vld [vmem:[%s2141_s8 + $0x8] sm:$0xff]  ;;  %1854 = vmatpush.msra.mxu2 %v2147_v5  ;;  %v294_v30 = vsub.f32 %v292_v13, %v293_v21  ;;  %243 = vmatpush.msra.mxu0 %v2147_v5  ;;  %s1762_s27 = sshll.u32 %s2406_s19, 4  ;;  %s1764_s28 = sshll.u32 %s1761_s26, 4  ;;  %s1763_s27 = int_to_ptr.vmem [resolvable:$true] %s1762_s27  ;;  %s1765_s28 = int_to_ptr.hbm [resolvable:$true] %s1764_s28 }
  0x1e   : > { %v2158_v14 = vand.u32 4294901760, %v221_v10  ;;  %v2166_v19 = vand.u32 4294901760, %v224_v11  ;;  %v2179_v28 = vand.u32 4294901760, %v215_v20  ;;  %v300_v32 = vsub.f32 %v298_v15, %v299_v23  ;;  %v210_v12 = vld [vmem:[#allocation2 + $0x88] sm:$0xff]  ;;  %s1749_s29 = scalar_lea.sflag [#allocation4], %s179_s11  ;;  %s2000_s30 = sshra.s32 %s1765_s28, 4  ;;  %s2001_s30 = int_to_ptr.hbm [resolvable:$true] %s2000_s30 }
  0x1f   : > { %v306_v33 = vsub.f32 %v304_v16, %v305_v24  ;;  %v312_v34 = vsub.f32 %v2164_v18, %v311_v26  ;;  %v218_v36 = vsel %vm213_vm0, %v190_v25, 0  ;;  %1855 = vmatpush.msra.mxu2 %v2151_v9  ;;  %v295_v38 = vand.u32 4294901760, %v294_v30  ;;  %245 = vmatpush.msra.mxu0 %v2151_v9  ;;  %s2002_s16 = scalar_lea.hbm %s2001_s30, 160  ;;  %s2006_s6 = scalar_lea.hbm %s2537_s3, 320 }
  0x20   : > { %v2171_v22 = vsub.f32 %v221_v10, %v2158_v14  ;;  %v2177_v27 = vsub.f32 %v224_v11, %v2166_v19  ;;  %v2192_v35 = vsub.f32 %v215_v20, %v2179_v28  ;;  %v301_v40 = vand.u32 4294901760, %v300_v32  ;;  %p2003_p0 = scmp.ne.s32.totalorder %s2001_s30, %s2002_s16  ;;  %p2007_p3 = scmp.lt.s32.totalorder %s2001_s30, %s2537_s3 }
  0x21   : > { %346 = vmatpush.msrb.mxu2 %v292_v13  ;;  %437 = vmatpush.msrb.mxu0 %v293_v21  ;;  %v2205_v43 = vand.u32 4294901760, %v218_v36  ;;  %v307_v45 = vand.u32 4294901760, %v306_v33  ;;  %v313_v50 = vand.u32 4294901760, %v312_v34  ;;  %v571_v57 = vand.u32 4294901760, %v2210_v46  ;;  %v195_v34 = vld [vmem:[#allocation2 + $0x10] sm:$0xff]  ;;  %p2008_p4 = scmp.lt.s32.totalorder %s2006_s6, %s2002_s16 }
  0x22   : > { %v2185_v31 = vand.u32 4294901760, %v2171_v22  ;;  %v2199_v41 = vand.u32 4294901760, %v2177_v27  ;;  %v2203_v42 = vand.u32 4294901760, %v2192_v35  ;;  %1856 = vmatpush.msra.mxu3 %v295_v38  ;;  %296 = vmatpush.msra.mxu1 %v295_v38  ;;  %v583_v0 = vand.u32 4294901760, %v582_v61  ;;  %p2004_p1 = pnand %p2003_p0, %p2117_p5 }
  0x23   : > { %349 = vmatpush.msrb.mxu2 %v298_v15  ;;  %441 = vmatpush.msrb.mxu0 %v299_v23  ;;  %v2217_v49 = vsub.f32 %v218_v36, %v2205_v43  ;;  %v572_v62 = vsub.f32 %v2210_v46, %v571_v57  ;;  %v578_v1 = vsub.f32 %v2223_v52, %v577_v60  ;;  %v522_v6 = vand.u32 4294901760, %v194_v2  ;;  %p2009_p7 = por %p2008_p4, %p2007_p3 }
  0x24   : > { %v265_v39 = vsub.f32 %v2171_v22, %v2185_v31  ;;  %v249_v48 = vsub.f32 %v2192_v35, %v2203_v42  ;;  %1857 = vmatpush.msra.mxu3 %v301_v40  ;;  %v273_v51 = vsub.f32 %v2177_v27, %v2199_v41  ;;  %302 = vmatpush.msra.mxu1 %v301_v40  ;;  %v794_v13 = vand.u32 4294901760, %v210_v12  ;;  %p2005_p2 = pneg %p2004_p1 }
  0x25   : > { %352 = vmatpush.msrb.mxu2 %v304_v16  ;;  %v2228_v55 = vand.u32 4294901760, %v2217_v49  ;;  %445 = vmatpush.msrb.mxu0 %v305_v24  ;;  %v584_v7 = vsub.f32 %v582_v61, %v583_v0  ;;  %v579_v8 = vand.u32 4294901760, %v578_v1  ;;  %v800_v36 = vand.u32 4294901760, %v195_v34 }
  0x26   : > { %v2207_v44 = vand.u32 4294901760, %v265_v39  ;;  %v2225_v54 = vand.u32 4294901760, %v249_v48  ;;  %1858 = vmatpush.msra.mxu3 %v307_v45  ;;  %308 = vmatpush.msra.mxu1 %v307_v45  ;;  %v2236_v59 = vand.u32 4294901760, %v273_v51  ;;  %v848_v15 = vsub.f32 %v210_v12, %v794_v13  ;;  %p2010_p8 = pnand %p2009_p7, %p2005_p2 }
  0x27   : > { %v257_v58 = vsub.f32 %v2217_v49, %v2228_v55  ;;  %355 = vmatpush.msrb.mxu2 %v2164_v18  ;;  %449 = vmatpush.msrb.mxu0 %v311_v26  ;;  %v585_v10 = vand.u32 4294901760, %v584_v7  ;;  %v205_v18 = vld [vmem:[#allocation2 + $0x60] sm:$0xff]  ;;  %v200_v26 = vld [vmem:[#allocation2 + $0x38] sm:$0xff]  ;;  %v866_v38 = vsub.f32 %v195_v34, %v800_v36 }
  0x28   : > { %267 = vmatmul.f32.vlgmr.msra.gmra.mxu2 %v2207_v44  ;;  %251 = vmatmul.f32.vlgmr.msra.gmra.mxu0 %v2225_v54  ;;  %v849_v16 = vand.u32 4294901760, %v848_v15  ;;  %v796_v21 = vand.u32 4294901760, %v205_v18  ;;  %v798_v30 = vand.u32 4294901760, %v200_v26  ;;  %v196_v7 = vld [vmem:[#allocation2 + $0x18] sm:$0xff] }
  0x29   : > { %1859 = vmatpush.msra.mxu3 %v313_v50  ;;  %314 = vmatpush.msra.mxu1 %v313_v50  ;;  %v2247_v63 = vand.u32 4294901760, %v257_v58  ;;  %v867_v40 = vand.u32 4294901760, %v866_v38 }
  0x2a   : > { %324 = vmatmul.f32.vlgmr.msra.gmra.mxu3 %v2158_v14  ;;  %316 = vmatmul.f32.vlgmr.msra.gmra.mxu1 %v2179_v28  ;;  %v850_v17 = vsub.f32 %v848_v15, %v849_v16  ;;  %v854_v23 = vsub.f32 %v205_v18, %v796_v21  ;;  %v860_v32 = vsub.f32 %v200_v26, %v798_v30 }
  0x2b   : > { %390 = vmatpush.msrb.mxu3 %v2143_v3  ;;  %480 = vmatpush.msrb.mxu1 %v2143_v3  ;;  %v573_v3 = vand.u32 4294901760, %v572_v62  ;;  %v868_v45 = vsub.f32 %v866_v38, %v867_v40 }
  0x2c   : > { %517 = vmatpush.msra.mxu2 %v2181_v29  ;;  %624 = vmatpush.msra.mxu0 %v2210_v46  ;;  %v851_v20 = vand.u32 4294901760, %v850_v17  ;;  %v855_v24 = vand.u32 4294901760, %v854_v23  ;;  %v861_v33 = vand.u32 4294901760, %v860_v32 }
  0x2d   : > { %392 = vmatpush.msrb.mxu3 %v2145_v4  ;;  %482 = vmatpush.msrb.mxu1 %v2145_v4  ;;  %v588_v4 = vsub.f32 %v194_v2, %v522_v6  ;;  %v869_v46 = vand.u32 4294901760, %v868_v45 }
  0x2e   : > { %519 = vmatpush.msra.mxu2 %v2212_v47  ;;  %627 = vmatpush.msra.mxu0 %v2223_v52  ;;  %v856_v25 = vsub.f32 %v854_v23, %v855_v24  ;;  %v862_v37 = vsub.f32 %v860_v32, %v861_v33 }
  0x2f   : > { %394 = vmatpush.msrb.mxu3 %v2147_v5  ;;  %484 = vmatpush.msrb.mxu1 %v2147_v5  ;;  %v589_v11 = vand.u32 4294901760, %v588_v4 }
  0x30   : > { %275 = vmatmul.f32.gmra.mxu2 %v2236_v59  ;;  %259 = vmatmul.f32.gmra.mxu0 %v2247_v63  ;;  %v863_v39 = vand.u32 4294901760, %v862_v37  ;;  %v197_v37 = vld [vmem:[#allocation2 + $0x20] sm:$0xff] }
  0x31   : > { %396 = vmatpush.msrb.mxu3 %v2151_v9  ;;  %486 = vmatpush.msrb.mxu1 %v2151_v9  ;;  %v590_v5 = vsub.f32 %v588_v4, %v589_v11 }
  0x32   : > { %328 = vmatmul.f32.gmra.mxu3 %v2166_v19  ;;  %320 = vmatmul.f32.gmra.mxu1 %v2205_v43 }
  0x33   : > { %574 = vmatpush.msra.mxu3 %v573_v3  ;;  %668 = vmatpush.msra.mxu1 %v2181_v29  ;;  %v591_v9 = vand.u32 4294901760, %v590_v5 }
  0x34   : > { %521 = vmatpush.msra.mxu2 %v2230_v56  ;;  %630 = vmatpush.msra.mxu0 %v582_v61 }
  0x35   : > { %580 = vmatpush.msra.mxu3 %v579_v8  ;;  %670 = vmatpush.msra.mxu1 %v2212_v47  ;;  %v1078_v8 = vand.u32 4294901760, %v196_v7 }
  0x36   : > { %523 = vmatpush.msra.mxu2 %v522_v6  ;;  %633 = vmatpush.msra.mxu0 %v588_v4 }
  0x37   : > { %586 = vmatpush.msra.mxu3 %v585_v10  ;;  %672 = vmatpush.msra.mxu1 %v2230_v56  ;;  %v1144_v10 = vsub.f32 %v196_v7, %v1078_v8 }
  0x38   : > { %358 = vmatmul.f32.vlgmr.msrb.gmra.mxu2 %v2192_v35  ;;  %451 = vmatmul.f32.vlgmr.msrb.gmra.mxu0 %v2179_v28 }
  0x39   : > { %715 = vmatpush.msrb.mxu2 %v571_v57  ;;  %674 = vmatpush.msra.mxu1 %v522_v6  ;;  %v1074_v57 = vand.u32 4294901760, %v206_v53 }
  0x3a   : > { %400 = vmatmul.f32.vlgmr.msrb.gmra.mxu3 %v2203_v42  ;;  %488 = vmatmul.f32.vlgmr.msrb.gmra.mxu1 %v2179_v28 }
  0x3b   : > { %592 = vmatpush.msra.mxu3 %v591_v9  ;;  %719 = vmatpush.msrb.mxu2 %v577_v60  ;;  %v1132_v58 = vsub.f32 %v206_v53, %v1074_v57 }
  0x3c   : > { %795 = vmatpush.msrb.mxu0 %v794_v13  ;;  %852 = vmatpush.msrb.mxu1 %v851_v20 }
  0x3d   : > { %758 = vmatpush.msrb.mxu3 %v2181_v29  ;;  %723 = vmatpush.msrb.mxu2 %v583_v0  ;;  %v857_v29 = vand.u32 4294901760, %v856_v25  ;;  %v1133_v60 = vand.u32 4294901760, %v1132_v58  ;;  %v201_v0 = vld [vmem:[#allocation2 + $0x40] sm:$0xff] }
  0x3e   : > { %797 = vmatpush.msrb.mxu0 %v796_v21  ;;  %v1076_v1 = vand.u32 4294901760, %v201_v0 }
  0x3f   : > { %760 = vmatpush.msrb.mxu3 %v2212_v47  ;;  %727 = vmatpush.msrb.mxu2 %v589_v11  ;;  %v211_v47 = vld [vmem:[#allocation2 + $0x90] sm:$0xff]  ;;  %v1134_v61 = vsub.f32 %v1132_v58, %v1133_v60  ;;  %v1145_v11 = vand.u32 4294901760, %v1144_v10 }
  0x40   : > { %363 = vmatmul.f32.gmra.mxu2 %v2217_v49  ;;  %455 = vmatmul.f32.gmra.mxu0 %v2205_v43  ;;  %v1072_v48 = vand.u32 4294901760, %v211_v47  ;;  %v1138_v2 = vsub.f32 %v201_v0, %v1076_v1 }
  0x41   : > { %762 = vmatpush.msrb.mxu3 %v2230_v56  ;;  %858 = vmatpush.msrb.mxu1 %v857_v29  ;;  %v1135_v62 = vand.u32 4294901760, %v1134_v61  ;;  %v1146_v5 = vsub.f32 %v1144_v10, %v1145_v11 }
  0x42   : > { %406 = vmatmul.f32.gmra.mxu3 %v2228_v55  ;;  %492 = vmatmul.f32.gmra.mxu1 %v2205_v43  ;;  %v1126_v50 = vsub.f32 %v211_v47, %v1072_v48  ;;  %v2361_v47 = vand.u32 4294901760, %v197_v37 }
  0x43   : > { %764 = vmatpush.msrb.mxu3 %v522_v6  ;;  %799 = vmatpush.msrb.mxu0 %v798_v30  ;;  %v1139_v6 = vand.u32 4294901760, %v1138_v2  ;;  %v1147_v9 = vand.u32 4294901760, %v1146_v5 }
  0x44   : > { %864 = vmatpush.msrb.mxu1 %v863_v39  ;;  %v1127_v51 = vand.u32 4294901760, %v1126_v50  ;;  %v1422_v53 = vsub.f32 %v197_v37, %v2361_v47 }
  0x45   : > { %801 = vmatpush.msrb.mxu0 %v800_v36  ;;  %v1140_v3 = vsub.f32 %v1138_v2, %v1139_v6 }
  0x46   : > { %870 = vmatpush.msrb.mxu1 %v869_v46  ;;  %v1128_v52 = vsub.f32 %v1126_v50, %v1127_v51 }
  0x47   : > { %v1141_v4 = vand.u32 4294901760, %v1140_v3 }
  0x48   : > { %368 = vmatmul.f32.gmra.mxu2 %v2171_v22  ;;  %459 = vmatmul.f32.gmra.mxu0 %v2158_v14  ;;  %v1129_v56 = vand.u32 4294901760, %v1128_v52 }
  0x4a   : > { %412 = vmatmul.f32.gmra.mxu3 %v2185_v31  ;;  %496 = vmatmul.f32.gmra.mxu1 %v2158_v14 }
  0x50   : > { %373 = vmatmul.f32.gmra.mxu2 %v2177_v27  ;;  %463 = vmatmul.f32.gmra.mxu0 %v2166_v19 }
  0x52   : > { %418 = vmatmul.f32.gmra.mxu3 %v2199_v41  ;;  %500 = vmatmul.f32.gmra.mxu1 %v2166_v19 }
  0x58   : > { %529 = vmatmul.f32.vlgmr.msra.gmra.mxu2 %v2225_v54  ;;  %636 = vmatmul.f32.vlgmr.msra.gmra.mxu0 %v2192_v35 }
  0x59   : > { %902 = vmatpush.msra.mxu2 %v848_v15  ;;  %993 = vmatpush.msra.mxu0 %v849_v16 }
  0x5a   : > { %594 = vmatmul.f32.vlgmr.msra.gmra.mxu3 %v2179_v28  ;;  %678 = vmatmul.f32.vlgmr.msra.gmra.mxu1 %v2203_v42 }
  0x5b   : > { %905 = vmatpush.msra.mxu2 %v854_v23  ;;  %946 = vmatpush.msra.mxu3 %v794_v13 }
  0x5c   : > { %997 = vmatpush.msra.mxu0 %v855_v24  ;;  %1036 = vmatpush.msra.mxu1 %v794_v13  ;;  %v207_v24 = vld [vmem:[#allocation2 + $0x70] sm:$0xff] }
  0x5d   : > { %908 = vmatpush.msra.mxu2 %v860_v32  ;;  %948 = vmatpush.msra.mxu3 %v796_v21  ;;  %v2350_v26 = vand.u32 4294901760, %v207_v24  ;;  %v202_v32 = vld [vmem:[#allocation2 + $0x48] sm:$0xff] }
  0x5e   : > { %1001 = vmatpush.msra.mxu0 %v861_v33  ;;  %1038 = vmatpush.msra.mxu1 %v796_v21  ;;  %v212_v21 = vld [vmem:[#allocation2 + $0x98] sm:$0xff] }
  0x5f   : > { %911 = vmatpush.msra.mxu2 %v866_v38  ;;  %950 = vmatpush.msra.mxu3 %v798_v30  ;;  %v2345_v23 = vand.u32 4294901760, %v212_v21  ;;  %v1410_v34 = vsub.f32 %v207_v24, %v2350_v26 }
  0x60   : > { %537 = vmatmul.f32.gmra.mxu2 %v2247_v63  ;;  %641 = vmatmul.f32.gmra.mxu0 %v2217_v49 }
  0x61   : > { %952 = vmatpush.msra.mxu3 %v800_v36  ;;  %1005 = vmatpush.msra.mxu0 %v867_v40  ;;  %v1404_v25 = vsub.f32 %v212_v21, %v2345_v23  ;;  %v1411_v45 = vand.u32 4294901760, %v1410_v34 }
  0x62   : > { %598 = vmatmul.f32.gmra.mxu3 %v2205_v43  ;;  %684 = vmatmul.f32.gmra.mxu1 %v2228_v55 }
  0x63   : > { %1040 = vmatpush.msra.mxu1 %v798_v30  ;;  %v1405_v33 = vand.u32 4294901760, %v1404_v25 }
  0x65   : > { %1042 = vmatpush.msra.mxu1 %v800_v36  ;;  %v2357_v36 = vand.u32 4294901760, %v202_v32  ;;  %v1406_v40 = vsub.f32 %v1404_v25, %v1405_v33 }
  0x67   : > { %v1416_v46 = vsub.f32 %v202_v32, %v2357_v36 }
  0x68   : > { %545 = vmatmul.f32.gmra.mxu2 %v2207_v44  ;;  %646 = vmatmul.f32.gmra.mxu0 %v2171_v22 }
  0x69   : > { %v1417_v52 = vand.u32 4294901760, %v1416_v46 }
  0x6a   : > { %602 = vmatmul.f32.gmra.mxu3 %v2158_v14  ;;  %690 = vmatmul.f32.gmra.mxu1 %v2185_v31 }
  0x70   : > { %553 = vmatmul.f32.gmra.mxu2 %v2236_v59  ;;  %651 = vmatmul.f32.gmra.mxu0 %v2177_v27 }
  0x72   : > { %606 = vmatmul.f32.gmra.mxu3 %v2166_v19  ;;  %696 = vmatmul.f32.gmra.mxu1 %v2199_v41 }
  0x78   : > { %729 = vmatmul.f32.vlgmr.msrb.gmra.mxu2 %v2179_v28  ;;  %807 = vmatmul.f32.vlgmr.msrb.gmra.mxu0 %v2225_v54 }
  0x79   : > { %1073 = vmatpush.msrb.mxu2 %v1072_v48  ;;  %1180 = vmatpush.msrb.mxu0 %v1126_v50  ;;  %v1407_v50 = vand.u32 4294901760, %v1406_v40 }
  0x7a   : > { %766 = vmatmul.f32.vlgmr.msrb.gmra.mxu3 %v2179_v28  ;;  %872 = vmatmul.f32.vlgmr.msrb.gmra.mxu1 %v2179_v28 }
  0x7b   : > { %1224 = vmatpush.msrb.mxu1 %v1072_v48  ;;  %1130 = vmatpush.msrb.mxu3 %v1129_v56 }
  0x7c   : > { %1075 = vmatpush.msrb.mxu2 %v1074_v57  ;;  %1183 = vmatpush.msrb.mxu0 %v1132_v58  ;;  %v1418_v58 = vsub.f32 %v1416_v46, %v1417_v52 }
  0x7d   : > { %1226 = vmatpush.msrb.mxu1 %v1074_v57  ;;  %1136 = vmatpush.msrb.mxu3 %v1135_v62  ;;  %v2373_v62 = vld [vmem:[%s2535_s1] sm:$0x1f] }
  0x7e   : > { %1077 = vmatpush.msrb.mxu2 %v1076_v1  ;;  %1186 = vmatpush.msrb.mxu0 %v1138_v2  ;;  %v1419_v2 = vand.u32 4294901760, %v1418_v58 }
  0x7f   : > { %1228 = vmatpush.msrb.mxu1 %v1076_v1  ;;  %1142 = vmatpush.msrb.mxu3 %v1141_v4 }
  0x80   : > { %733 = vmatmul.f32.gmra.mxu2 %v2205_v43  ;;  %815 = vmatmul.f32.gmra.mxu0 %v2247_v63 }
  0x81   : > { %1079 = vmatpush.msrb.mxu2 %v1078_v8  ;;  %1189 = vmatpush.msrb.mxu0 %v1144_v10 }
  0x82   : > { %770 = vmatmul.f32.gmra.mxu3 %v2205_v43  ;;  %876 = vmatmul.f32.gmra.mxu1 %v2205_v43 }
  0x83   : > { %1230 = vmatpush.msrb.mxu1 %v1078_v8  ;;  %1148 = vmatpush.msrb.mxu3 %v1147_v9 }
  0x88   : > { %737 = vmatmul.f32.gmra.mxu2 %v2158_v14  ;;  %823 = vmatmul.f32.gmra.mxu0 %v2207_v44 }
  0x8a   : > { %774 = vmatmul.f32.gmra.mxu3 %v2158_v14  ;;  %880 = vmatmul.f32.gmra.mxu1 %v2158_v14 }
  0x90   : > { %741 = vmatmul.f32.gmra.mxu2 %v2166_v19  ;;  %831 = vmatmul.f32.gmra.mxu0 %v2236_v59 }
  0x92   : > { %778 = vmatmul.f32.gmra.mxu3 %v2166_v19  ;;  %884 = vmatmul.f32.gmra.mxu1 %v2166_v19 }
  0x98   : > { %914 = vmatmul.f32.vlgmr.msra.gmra.mxu2 %v2192_v35  ;;  %1007 = vmatmul.f32.vlgmr.msra.gmra.mxu0 %v2179_v28 }
  0x99   : > { %1271 = vmatpush.msra.mxu2 %v1127_v51  ;;  %1351 = vmatpush.msra.mxu0 %v2345_v23  ;;  %v1412_v51 = vsub.f32 %v1410_v34, %v1411_v45 }
  0x9a   : > { %956 = vmatmul.f32.vlgmr.msra.gmra.mxu3 %v2203_v42  ;;  %1044 = vmatmul.f32.vlgmr.msra.gmra.mxu1 %v2179_v28 }
  0x9b   : > { %1275 = vmatpush.msra.mxu2 %v1133_v60  ;;  %1314 = vmatpush.msra.mxu3 %v1072_v48  ;;  %v1423_v60 = vand.u32 4294901760, %v1422_v53 }
  0x9c   : > { %1353 = vmatpush.msra.mxu0 %v2350_v26  ;;  %1408 = vmatpush.msra.mxu1 %v1407_v50 }
  0x9d   : > { %1279 = vmatpush.msra.mxu2 %v1139_v6  ;;  %1316 = vmatpush.msra.mxu3 %v1074_v57  ;;  %v1413_v57 = vand.u32 4294901760, %v1412_v51  ;;  %v1424_v6 = vsub.f32 %v1422_v53, %v1423_v60 }
  0x9e   : > { %1355 = vmatpush.msra.mxu0 %v2357_v36 }
  0x9f   : > { %1283 = vmatpush.msra.mxu2 %v1145_v11  ;;  %1318 = vmatpush.msra.mxu3 %v1076_v1  ;;  %v1425_v10 = vand.u32 4294901760, %v1424_v6 }
  0xa0   : > { %919 = vmatmul.f32.gmra.mxu2 %v2217_v49  ;;  %1011 = vmatmul.f32.gmra.mxu0 %v2205_v43 }
  0xa1   : > { %1320 = vmatpush.msra.mxu3 %v1078_v8  ;;  %1357 = vmatpush.msra.mxu0 %v2361_v47  ;;  %v2377_v8 = vperm.slane %v2373_v62, 0 }
  0xa2   : > { %962 = vmatmul.f32.gmra.mxu3 %v2228_v55  ;;  %1048 = vmatmul.f32.gmra.mxu1 %v2205_v43 }
  0xa3   : > { %1414 = vmatpush.msra.mxu1 %v1413_v57 }
  0xa5   : > { %v252_v12 = vpop.f32.mrf.mxu0  ;;  %1420 = vmatpush.msra.mxu1 %v1419_v2 }
  0xa7   : > { %v317_v15 = vpop.f32.mrf.mxu1  ;;  %1426 = vmatpush.msra.mxu1 %v1425_v10 }
  0xa8   : > { %924 = vmatmul.f32.gmra.mxu2 %v2171_v22  ;;  %1015 = vmatmul.f32.gmra.mxu0 %v2158_v14  ;;  %v318_v48 = vadd.f32 %v317_v15, %v252_v12 }
  0xaa   : > { %968 = vmatmul.f32.gmra.mxu3 %v2185_v31  ;;  %1052 = vmatmul.f32.gmra.mxu1 %v2158_v14 }
  0xab   : > { %v2329_v13 = vpop.f32.mrf.mxu2 }
  0xad   : > { %v2335_v16 = vpop.f32.mrf.mxu3  ;;  %v2337_v17 = vpop.f32.mrf.mxu0 }
  0xaf   : > { %v2341_v20 = vpop.f32.mrf.mxu1 }
  0xb0   : > { %929 = vmatmul.f32.gmra.mxu2 %v2177_v27  ;;  %1019 = vmatmul.f32.gmra.mxu0 %v2166_v19  ;;  %v322_v11 = vadd.f32 %v2341_v20, %v2337_v17 }
  0xb2   : > { %974 = vmatmul.f32.gmra.mxu3 %v2199_v41  ;;  %1056 = vmatmul.f32.gmra.mxu1 %v2166_v19 }
  0xb3   : > { %v2339_v18 = vpop.f32.mrf.mxu2 }
  0xb5   : > { %v2353_v29 = vpop.f32.mrf.mxu3  ;;  %v452_v30 = vpop.f32.mrf.mxu0 }
  0xb7   : > { %v489_v39 = vpop.f32.mrf.mxu1 }
  0xb8   : > { %1085 = vmatmul.f32.vlgmr.msrb.gmra.mxu2 %v2225_v54  ;;  %1192 = vmatmul.f32.vlgmr.msrb.gmra.mxu0 %v2192_v35 }
  0xb9   : > { %1458 = vmatpush.msrb.mxu2 %v1404_v25  ;;  %1549 = vmatpush.msrb.mxu0 %v1405_v33 }
  0xba   : > { %1150 = vmatmul.f32.vlgmr.msrb.gmra.mxu3 %v2179_v28  ;;  %1234 = vmatmul.f32.vlgmr.msrb.gmra.mxu1 %v2203_v42 }
  0xbb   : > { %v359_v38 = vpop.f32.mrf.mxu2  ;;  %1461 = vmatpush.msrb.mxu2 %v1410_v34  ;;  %1502 = vmatpush.msrb.mxu3 %v2345_v23 }
  0xbc   : > { %v360_v56 = vadd.f32 %v359_v38, %v318_v48  ;;  %1553 = vmatpush.msrb.mxu0 %v1411_v45  ;;  %1592 = vmatpush.msrb.mxu1 %v2345_v23  ;;  %v326_v23 = vadd.f32 %v2335_v16, %v2329_v13  ;;  %v330_v48 = vadd.f32 %v2353_v29, %v2339_v18 }
  0xbd   : > { %1464 = vmatpush.msrb.mxu2 %v1416_v46  ;;  %v401_v61 = vpop.f32.mrf.mxu3  ;;  %v456_v0 = vpop.f32.mrf.mxu0  ;;  %1504 = vmatpush.msrb.mxu3 %v2350_v26 }
  0xbe   : > { %v402_v1 = vadd.f32 %v401_v61, %v360_v56  ;;  %1557 = vmatpush.msrb.mxu0 %v1417_v52  ;;  %1594 = vmatpush.msrb.mxu1 %v2350_v26 }
  0xbf   : > { %1467 = vmatpush.msrb.mxu2 %v1422_v53  ;;  %v493_v4 = vpop.f32.mrf.mxu1  ;;  %1506 = vmatpush.msrb.mxu3 %v2357_v36 }
  0xc0   : > { %1093 = vmatmul.f32.gmra.mxu2 %v2247_v63  ;;  %v453_v7 = vadd.f32 %v452_v30, %v402_v1  ;;  %1197 = vmatmul.f32.gmra.mxu0 %v2217_v49 }
  0xc1   : > { %1508 = vmatpush.msrb.mxu3 %v2361_v47  ;;  %1561 = vmatpush.msrb.mxu0 %v1423_v60 }
  0xc2   : > { %v490_v5 = vadd.f32 %v489_v39, %v453_v7  ;;  %1154 = vmatmul.f32.gmra.mxu3 %v2205_v43  ;;  %1240 = vmatmul.f32.gmra.mxu1 %v2228_v55 }
  0xc3   : > { %v364_v3 = vpop.f32.mrf.mxu2  ;;  %1596 = vmatpush.msrb.mxu1 %v2357_v36 }
  0xc4   : > { %v365_v9 = vadd.f32 %v364_v3, %v322_v11  ;;  %v1628_v12 = vsub.f32 %v490_v5, %v2377_v8 }
  0xc5   : > { %v407_v15 = vpop.f32.mrf.mxu3  ;;  %v460_v21 = vpop.f32.mrf.mxu0  ;;  %1598 = vmatpush.msrb.mxu1 %v2361_v47 }
  0xc6   : > { %v1648_v17 = vmul.f32 %v1628_v12, %v1628_v12  ;;  %v408_v20 = vadd.f32 %v407_v15, %v365_v9 }
  0xc7   : > { %v497_v32 = vpop.f32.mrf.mxu1 }
  0xc8   : > { %1101 = vmatmul.f32.gmra.mxu2 %v2207_v44  ;;  %v1668_v24 = vmul.f32 -0.5, %v1648_v17  ;;  %v457_v30 = vadd.f32 %v456_v0, %v408_v20  ;;  %1202 = vmatmul.f32.gmra.mxu0 %v2171_v22 }
  0xca   : > { %v1688_v33 = vmul.f32 1.442695, %v1668_v24  ;;  %v494_v34 = vadd.f32 %v493_v4, %v457_v30  ;;  %1158 = vmatmul.f32.gmra.mxu3 %v2158_v14  ;;  %1246 = vmatmul.f32.gmra.mxu1 %v2185_v31 }
  0xcb   : > { %v369_v25 = vpop.f32.mrf.mxu2 }
  0xcc   : > { %1916 = vpow2.f32 %v1688_v33  ;;  %v370_v26 = vadd.f32 %v369_v25, %v326_v23  ;;  %v1633_v37 = vsub.f32 %v494_v34, %v2377_v8 }
  0xcd   : > { %v413_v36 = vpop.f32.mrf.mxu3  ;;  %v464_v38 = vpop.f32.mrf.mxu0 }
  0xce   : > { %v1653_v39 = vmul.f32 %v1633_v37, %v1633_v37  ;;  %v414_v13 = vadd.f32 %v413_v36, %v370_v26 }
  0xcf   : > { %v501_v46 = vpop.f32.mrf.mxu1 }
  0xd0   : > { %1109 = vmatmul.f32.gmra.mxu2 %v2236_v59  ;;  %v1673_v16 = vmul.f32 -0.5, %v1653_v39  ;;  %v461_v45 = vadd.f32 %v460_v21, %v414_v13  ;;  %1207 = vmatmul.f32.gmra.mxu0 %v2177_v27 }
  0xd2   : > { %v1917_v47 = vpop.eup %1916  ;;  %v1698_v50 = vmul.f32 1.442695, %v1673_v16  ;;  %v498_v51 = vadd.f32 %v497_v32, %v461_v45  ;;  %1162 = vmatmul.f32.gmra.mxu3 %v2166_v19  ;;  %1252 = vmatmul.f32.gmra.mxu1 %v2199_v41 }
  0xd3   : > { %v374_v40 = vpop.f32.mrf.mxu2  ;;  %1728 = vst [vmem:[%s2406_s19] sm:$0xff] %v1917_v47 }
  0xd4   : > { %1918 = vpow2.f32 %v1698_v50  ;;  %v375_v52 = vadd.f32 %v374_v40, %v330_v48  ;;  %v1638_v53 = vsub.f32 %v498_v51, %v2377_v8 }
  0xd5   : > { %v419_v56 = vpop.f32.mrf.mxu3  ;;  %v637_v57 = vpop.f32.mrf.mxu0 }
  0xd6   : > { %v1658_v18 = vmul.f32 %v1638_v53, %v1638_v53  ;;  %v420_v29 = vadd.f32 %v419_v56, %v375_v52 }
  0xd7   : > { %v679_v0 = vpop.f32.mrf.mxu1 }
  0xd8   : > { %1285 = vmatmul.f32.vlgmr.msra.gmra.mxu2 %v2179_v28  ;;  %v1678_v58 = vmul.f32 -0.5, %v1658_v18  ;;  %v465_v60 = vadd.f32 %v464_v38, %v420_v29  ;;  %1363 = vmatmul.f32.vlgmr.msra.gmra.mxu0 %v2225_v54  ;;  %v1619_v38 = vperm.slane %v2373_v62, 1 }
  0xda   : > { %v1919_v1 = vpop.eup %1918  ;;  %v1708_v2 = vmul.f32 1.442695, %v1678_v58  ;;  %v502_v6 = vadd.f32 %v501_v46, %v465_v60  ;;  %1322 = vmatmul.f32.vlgmr.msra.gmra.mxu3 %v2179_v28  ;;  %1428 = vmatmul.f32.vlgmr.msra.gmra.mxu1 %v2179_v28 }
  0xdb   : > { %v530_v61 = vpop.f32.mrf.mxu2  ;;  %1733 = vst [vmem:[%s2406_s19 + $0x28] sm:$0xff] %v1919_v1 }
  0xdc   : > { %1920 = vpow2.f32 %v1708_v2  ;;  %v1643_v3 = vsub.f32 %v502_v6, %v2377_v8 }
  0xdd   : > { %v595_v7 = vpop.f32.mrf.mxu3  ;;  %v642_v4 = vpop.f32.mrf.mxu0 }
  0xde   : > { %v1663_v10 = vmul.f32 %v1643_v3, %v1643_v3  ;;  %v596_v32 = vadd.f32 %v595_v7, %v530_v61 }
  0xdf   : > { %v685_v54 = vpop.f32.mrf.mxu1 }
  0xe0   : > { %1289 = vmatmul.f32.gmra.mxu2 %v2205_v43  ;;  %v1683_v11 = vmul.f32 -0.5, %v1663_v10  ;;  %1371 = vmatmul.f32.gmra.mxu0 %v2247_v63  ;;  %v638_v33 = vadd.f32 %v637_v57, %v596_v32 }
  0xe2   : > { %v1921_v9 = vpop.eup %1920  ;;  %v1718_v12 = vmul.f32 1.442695, %v1683_v11  ;;  %1326 = vmatmul.f32.gmra.mxu3 %v2205_v43  ;;  %1432 = vmatmul.f32.gmra.mxu1 %v2205_v43  ;;  %v680_v37 = vadd.f32 %v679_v0, %v638_v33 }
  0xe3   : > { %v538_v5 = vpop.f32.mrf.mxu2  ;;  %1738 = vst [vmem:[%s2406_s19 + $0x50] sm:$0xff] %v1921_v9 }
  0xe4   : > { %1922 = vpow2.f32 %v1718_v12 }
  0xe5   : > { %v599_v8 = vpop.f32.mrf.mxu3  ;;  %v647_v15 = vpop.f32.mrf.mxu0 }
  0xe6   : > { %v600_v36 = vadd.f32 %v599_v8, %v538_v5 }
  0xe7   : > { %v691_v17 = vpop.f32.mrf.mxu1 }
  0xe8   : > { %1293 = vmatmul.f32.gmra.mxu2 %v2158_v14  ;;  %1379 = vmatmul.f32.gmra.mxu0 %v2207_v44  ;;  %v643_v13 = vadd.f32 %v642_v4, %v600_v36 }
  0xea   : > { %v1923_v20 = vpop.eup %1922  ;;  %1330 = vmatmul.f32.gmra.mxu3 %v2158_v14  ;;  %1436 = vmatmul.f32.gmra.mxu1 %v2158_v14  ;;  %v686_v47 = vadd.f32 %v685_v54, %v643_v13 }
  0xeb   : > { %v546_v21 = vpop.f32.mrf.mxu2  ;;  %1743 = vst [vmem:[%s2406_s19 + $0x78] sm:$0xff] %v1923_v20 }
  0xed   : > { %v603_v63 = vpop.f32.mrf.mxu3  ;;  %v652_v24 = vpop.f32.mrf.mxu0 }
  0xef   : > { %v2428_v30 = vpop.f32.mrf.mxu1 }
  0xf0   : > { %1297 = vmatmul.f32.gmra.mxu2 %v2166_v19  ;;  %1387 = vmatmul.f32.gmra.mxu0 %v2236_v59 }
  0xf2   : > { %1334 = vmatmul.f32.gmra.mxu3 %v2166_v19  ;;  %1440 = vmatmul.f32.gmra.mxu1 %v2166_v19 }
  0xf3   : > { %v554_v25 = vpop.f32.mrf.mxu2 }
  0xf5   : > { %v607_v44 = vpop.f32.mrf.mxu3  ;;  %v2434_v23 = vpop.f32.mrf.mxu0 }
  0xf7   : > { %v2436_v26 = vpop.f32.mrf.mxu1 }
  0xf8   : > { %1470 = vmatmul.f32.vlgmr.msrb.gmra.mxu2 %v2192_v35  ;;  %1563 = vmatmul.f32.vlgmr.msrb.gmra.mxu0 %v2179_v28  ;;  %v874_v20 = vadd.f32 %v2436_v26, %v2434_v23 }
  0xfa   : > { %1512 = vmatmul.f32.vlgmr.msrb.gmra.mxu3 %v2203_v42  ;;  %1600 = vmatmul.f32.vlgmr.msrb.gmra.mxu1 %v2179_v28  ;;  %v604_v42 = vadd.f32 %v603_v63, %v546_v21 }
  0xfb   : > { %v730_v34 = vpop.f32.mrf.mxu2 }
  0xfc   : > { %v731_v59 = vadd.f32 %v730_v34, %v680_v37  ;;  %v648_v52 = vadd.f32 %v647_v15, %v604_v42  ;;  %v1620_v37 = vperm.slane %v2373_v62, 2 }
  0xfd   : > { %v767_v35 = vpop.f32.mrf.mxu3  ;;  %v2443_v39 = vpop.f32.mrf.mxu0 }
  0xfe   : > { %v768_v16 = vadd.f32 %v767_v35, %v731_v59 }
  0xff   : > { %v2445_v46 = vpop.f32.mrf.mxu1 }
 0x100   : > { %1475 = vmatmul.f32.gmra.mxu2 %v2217_v49  ;;  %v1629_v40 = vsub.f32 %v768_v16, %v1619_v38  ;;  %1567 = vmatmul.f32.gmra.mxu0 %v2205_v43  ;;  %v878_v59 = vadd.f32 %v2445_v46, %v2443_v39 }
 0x102   : > { %v1649_v48 = vmul.f32 %v1629_v40, %v1629_v40  ;;  %1518 = vmatmul.f32.gmra.mxu3 %v2228_v55  ;;  %1604 = vmatmul.f32.gmra.mxu1 %v2205_v43  ;;  %v692_v55 = vadd.f32 %v691_v17, %v648_v52  ;;  %v608_v43 = vadd.f32 %v607_v44, %v554_v25 }
 0x103   : > { %v734_v45 = vpop.f32.mrf.mxu2 }
 0x104   : > { %v1669_v28 = vmul.f32 -0.5, %v1649_v48  ;;  %v735_v49 = vadd.f32 %v734_v45, %v686_v47  ;;  %v653_v2 = vadd.f32 %v652_v24, %v608_v43 }
 0x105   : > { %v771_v50 = vpop.f32.mrf.mxu3  ;;  %v2451_v51 = vpop.f32.mrf.mxu0 }
 0x106   : > { %v1690_v53 = vmul.f32 1.442695, %v1669_v28  ;;  %v772_v56 = vadd.f32 %v771_v50, %v735_v49 }
 0x107   : > { %v2453_v29 = vpop.f32.mrf.mxu1 }
 0x108   : > { %1480 = vmatmul.f32.gmra.mxu2 %v2171_v22  ;;  %1924 = vpow2.f32 %v1690_v53  ;;  %v1634_v57 = vsub.f32 %v772_v56, %v1619_v38  ;;  %1571 = vmatmul.f32.gmra.mxu0 %v2158_v14  ;;  %v882_v49 = vadd.f32 %v2453_v29, %v2451_v51 }
 0x10a   : > { %v1654_v58 = vmul.f32 %v1634_v57, %v1634_v57  ;;  %1524 = vmatmul.f32.gmra.mxu3 %v2185_v31  ;;  %1608 = vmatmul.f32.gmra.mxu1 %v2158_v14  ;;  %v698_v14 = vadd.f32 %v2428_v30, %v653_v2 }
 0x10b   : > { %v738_v18 = vpop.f32.mrf.mxu2 }
 0x10c   : > { %v1674_v22 = vmul.f32 -0.5, %v1654_v58  ;;  %v739_v60 = vadd.f32 %v738_v18, %v692_v55 }
 0x10d   : > { %v775_v61 = vpop.f32.mrf.mxu3  ;;  %v2459_v0 = vpop.f32.mrf.mxu0 }
 0x10e   : > { %v1925_v1 = vpop.eup %1924  ;;  %v1700_v6 = vmul.f32 1.442695, %v1674_v22  ;;  %v776_v3 = vadd.f32 %v775_v61, %v739_v60 }
 0x10f   : > { %1729 = vst [vmem:[%s2406_s19 + $0x8] sm:$0xff] %v1925_v1  ;;  %v885_v10 = vpop.f32.mrf.mxu1 }
 0x110   : > { %1485 = vmatmul.f32.gmra.mxu2 %v2177_v27  ;;  %1926 = vpow2.f32 %v1700_v6  ;;  %v1639_v7 = vsub.f32 %v776_v3, %v1619_v38  ;;  %1575 = vmatmul.f32.gmra.mxu0 %v2166_v19  ;;  %v886_v61 = vadd.f32 %v885_v10, %v2459_v0 }
 0x112   : > { %v1659_v31 = vmul.f32 %v1639_v7, %v1639_v7  ;;  %1530 = vmatmul.f32.gmra.mxu3 %v2199_v41  ;;  %1612 = vmatmul.f32.gmra.mxu1 %v2166_v19 }
 0x113   : > { %v742_v4 = vpop.f32.mrf.mxu2 }
 0x114   : > { %v1679_v27 = vmul.f32 -0.5, %v1659_v31  ;;  %v743_v11 = vadd.f32 %v742_v4, %v698_v14 }
 0x115   : > { %v779_v5 = vpop.f32.mrf.mxu3  ;;  %v1008_v54 = vpop.f32.mrf.mxu0 }
 0x116   : > { %v1927_v9 = vpop.eup %1926  ;;  %v1710_v12 = vmul.f32 1.442695, %v1679_v27  ;;  %v780_v8 = vadd.f32 %v779_v5, %v743_v11 }
 0x117   : > { %1734 = vst [vmem:[%s2406_s19 + $0x30] sm:$0xff] %v1927_v9  ;;  %v1045_v17 = vpop.f32.mrf.mxu1 }
 0x118   : > { %1928 = vpow2.f32 %v1710_v12  ;;  %v1644_v15 = vsub.f32 %v780_v8, %v1619_v38 }
 0x11a   : > { %v1664_v63 = vmul.f32 %v1644_v15, %v1644_v15 }
 0x11b   : > { %v915_v21 = vpop.f32.mrf.mxu2 }
 0x11c   : > { %v1684_v41 = vmul.f32 -0.5, %v1664_v63  ;;  %v916_v24 = vadd.f32 %v915_v21, %v874_v20 }
 0x11d   : > { %v957_v19 = vpop.f32.mrf.mxu3  ;;  %v1012_v25 = vpop.f32.mrf.mxu0 }
 0x11e   : > { %v1929_v30 = vpop.eup %1928  ;;  %v1720_v32 = vmul.f32 1.442695, %v1684_v41  ;;  %v958_v44 = vadd.f32 %v957_v19, %v916_v24 }
 0x11f   : > { %1739 = vst [vmem:[%s2406_s19 + $0x58] sm:$0xff] %v1929_v30  ;;  %v1049_v36 = vpop.f32.mrf.mxu1 }
 0x120   : > { %1930 = vpow2.f32 %v1720_v32  ;;  %v1009_v34 = vadd.f32 %v1008_v54, %v958_v44 }
 0x122   : > { %v1046_v23 = vadd.f32 %v1045_v17, %v1009_v34 }
 0x123   : > { %v920_v33 = vpop.f32.mrf.mxu2 }
 0x124   : > { %v921_v26 = vadd.f32 %v920_v33, %v878_v59  ;;  %v1630_v38 = vsub.f32 %v1046_v23, %v1620_v37 }
 0x125   : > { %v963_v35 = vpop.f32.mrf.mxu3  ;;  %v1016_v13 = vpop.f32.mrf.mxu0 }
 0x126   : > { %v1931_v16 = vpop.eup %1930  ;;  %v1650_v40 = vmul.f32 %v1630_v38, %v1630_v38  ;;  %v964_v45 = vadd.f32 %v963_v35, %v921_v26 }
 0x127   : > { %1744 = vst [vmem:[%s2406_s19 + $0x80] sm:$0xff] %v1931_v16  ;;  %v1053_v28 = vpop.f32.mrf.mxu1 }
 0x128   : > { %v1670_v47 = vmul.f32 -0.5, %v1650_v40  ;;  %v1013_v48 = vadd.f32 %v1012_v25, %v964_v45  ;;  %v1621_v40 = vperm.slane %v2373_v62, 3 }
 0x12a   : > { %v1692_v50 = vmul.f32 1.442695, %v1670_v47  ;;  %v1050_v52 = vadd.f32 %v1049_v36, %v1013_v48 }
 0x12b   : > { %v925_v42 = vpop.f32.mrf.mxu2 }
 0x12c   : > { %1932 = vpow2.f32 %v1692_v50  ;;  %v926_v39 = vadd.f32 %v925_v42, %v882_v49  ;;  %v1635_v46 = vsub.f32 %v1050_v52, %v1620_v37 }
 0x12d   : > { %v969_v53 = vpop.f32.mrf.mxu3  ;;  %v1020_v56 = vpop.f32.mrf.mxu0 }
 0x12e   : > { %v1655_v57 = vmul.f32 %v1635_v46, %v1635_v46  ;;  %v970_v18 = vadd.f32 %v969_v53, %v926_v39 }
 0x12f   : > { %v1057_v22 = vpop.f32.mrf.mxu1 }
 0x130   : > { %v1675_v55 = vmul.f32 -0.5, %v1655_v57  ;;  %v1017_v58 = vadd.f32 %v1016_v13, %v970_v18 }
 0x132   : > { %v1933_v60 = vpop.eup %1932  ;;  %v1702_v1 = vmul.f32 1.442695, %v1675_v55  ;;  %v1054_v2 = vadd.f32 %v1053_v28, %v1017_v58 }
 0x133   : > { %v930_v43 = vpop.f32.mrf.mxu2  ;;  %1730 = vst [vmem:[%s2406_s19 + $0x10] sm:$0xff] %v1933_v60 }
 0x134   : > { %1934 = vpow2.f32 %v1702_v1  ;;  %v931_v51 = vadd.f32 %v930_v43, %v886_v61  ;;  %v1640_v29 = vsub.f32 %v1054_v2, %v1620_v37 }
 0x135   : > { %v975_v6 = vpop.f32.mrf.mxu3  ;;  %v1193_v3 = vpop.f32.mrf.mxu0 }
 0x136   : > { %v1660_v7 = vmul.f32 %v1640_v29, %v1640_v29  ;;  %v976_v4 = vadd.f32 %v975_v6, %v931_v51 }
 0x137   : > { %v1235_v11 = vpop.f32.mrf.mxu1 }
 0x138   : > { %v1680_v14 = vmul.f32 -0.5, %v1660_v7  ;;  %v1021_v31 = vadd.f32 %v1020_v56, %v976_v4 }
 0x13a   : > { %v1935_v5 = vpop.eup %1934  ;;  %v1712_v54 = vmul.f32 1.442695, %v1680_v14  ;;  %v1058_v9 = vadd.f32 %v1057_v22, %v1021_v31 }
 0x13b   : > { %v1086_v27 = vpop.f32.mrf.mxu2  ;;  %1735 = vst [vmem:[%s2406_s19 + $0x38] sm:$0xff] %v1935_v5 }
 0x13c   : > { %1936 = vpow2.f32 %v1712_v54  ;;  %v1645_v0 = vsub.f32 %v1058_v9, %v1620_v37 }
 0x13d   : > { %v1151_v10 = vpop.f32.mrf.mxu3  ;;  %v1198_v12 = vpop.f32.mrf.mxu0 }
 0x13e   : > { %v1665_v8 = vmul.f32 %v1645_v0, %v1645_v0  ;;  %v1152_v37 = vadd.f32 %v1151_v10, %v1086_v27 }
 0x13f   : > { %v1241_v17 = vpop.f32.mrf.mxu1 }
 0x140   : > { %v1685_v15 = vmul.f32 -0.5, %v1665_v8  ;;  %v1194_v23 = vadd.f32 %v1193_v3, %v1152_v37 }
 0x142   : > { %v1937_v20 = vpop.eup %1936  ;;  %v1722_v63 = vmul.f32 1.442695, %v1685_v15  ;;  %v1236_v35 = vadd.f32 %v1235_v11, %v1194_v23 }
 0x143   : > { %v1094_v21 = vpop.f32.mrf.mxu2  ;;  %1740 = vst [vmem:[%s2406_s19 + $0x60] sm:$0xff] %v1937_v20 }
 0x144   : > { %1938 = vpow2.f32 %v1722_v63 }
 0x145   : > { %v1155_v41 = vpop.f32.mrf.mxu3  ;;  %v1203_v24 = vpop.f32.mrf.mxu0 }
 0x146   : > { %v1156_v13 = vadd.f32 %v1155_v41, %v1094_v21 }
 0x147   : > { %v1247_v25 = vpop.f32.mrf.mxu1 }
 0x148   : > { %v1199_v42 = vadd.f32 %v1198_v12, %v1156_v13 }
 0x14a   : > { %v1939_v30 = vpop.eup %1938  ;;  %v1242_v52 = vadd.f32 %v1241_v17, %v1199_v42 }
 0x14b   : > { %v1102_v19 = vpop.f32.mrf.mxu2  ;;  %1745 = vst [vmem:[%s2406_s19 + $0x88] sm:$0xff] %v1939_v30 }
 0x14d   : > { %v1159_v32 = vpop.f32.mrf.mxu3  ;;  %v1208_v44 = vpop.f32.mrf.mxu0 }
 0x14e   : > { %v1160_v39 = vadd.f32 %v1159_v32, %v1102_v19 }
 0x14f   : > { %v1253_v34 = vpop.f32.mrf.mxu1 }
 0x150   : > { %v1204_v55 = vadd.f32 %v1203_v24, %v1160_v39 }
 0x152   : > { %v1248_v1 = vadd.f32 %v1247_v25, %v1204_v55 }
 0x153   : > { %v1110_v33 = vpop.f32.mrf.mxu2 }
 0x155   : > { %v1163_v36 = vpop.f32.mrf.mxu3  ;;  %v1364_v59 = vpop.f32.mrf.mxu0 }
 0x156   : > { %v1164_v2 = vadd.f32 %v1163_v36, %v1110_v33 }
 0x157   : > { %v1429_v38 = vpop.f32.mrf.mxu1 }
 0x158   : > { %v1209_v14 = vadd.f32 %v1208_v44, %v1164_v2  ;;  %v1430_v19 = vadd.f32 %v1429_v38, %v1364_v59 }
 0x15a   : > { %v1254_v9 = vadd.f32 %v1253_v34, %v1209_v14 }
 0x15b   : > { %v1286_v26 = vpop.f32.mrf.mxu2 }
 0x15c   : > { %v1287_v16 = vadd.f32 %v1286_v26, %v1236_v35  ;;  %v1622_v26 = vperm.slane %v2373_v62, 4 }
 0x15d   : > { %v1323_v45 = vpop.f32.mrf.mxu3  ;;  %v2482_v47 = vpop.f32.mrf.mxu0 }
 0x15e   : > { %v1324_v48 = vadd.f32 %v1323_v45, %v1287_v16 }
 0x15f   : > { %v1433_v50 = vpop.f32.mrf.mxu1 }
 0x160   : > { %v1631_v28 = vsub.f32 %v1324_v48, %v1621_v40  ;;  %v1434_v13 = vadd.f32 %v1433_v50, %v2482_v47 }
 0x162   : > { %v1651_v46 = vmul.f32 %v1631_v28, %v1631_v28 }
 0x163   : > { %v1290_v49 = vpop.f32.mrf.mxu2 }
 0x164   : > { %v1671_v53 = vmul.f32 -0.5, %v1651_v46  ;;  %v1291_v56 = vadd.f32 %v1290_v49, %v1242_v52 }
 0x165   : > { %v1327_v57 = vpop.f32.mrf.mxu3  ;;  %v2484_v18 = vpop.f32.mrf.mxu0 }
 0x166   : > { %v1694_v43 = vmul.f32 1.442695, %v1671_v53  ;;  %v1328_v58 = vadd.f32 %v1327_v57, %v1291_v56 }
 0x167   : > { %v1437_v61 = vpop.f32.mrf.mxu1 }
 0x168   : > { %1940 = vpow2.f32 %v1694_v43  ;;  %v1636_v22 = vsub.f32 %v1328_v58, %v1621_v40  ;;  %v1438_v46 = vadd.f32 %v1437_v61, %v2484_v18 }
 0x16a   : > { %v1656_v51 = vmul.f32 %v1636_v22, %v1636_v22 }
 0x16b   : > { %v1294_v60 = vpop.f32.mrf.mxu2 }
 0x16c   : > { %v1676_v29 = vmul.f32 -0.5, %v1656_v51  ;;  %v1295_v6 = vadd.f32 %v1294_v60, %v1248_v1 }
 0x16d   : > { %v1331_v3 = vpop.f32.mrf.mxu3  ;;  %v2486_v7 = vpop.f32.mrf.mxu0 }
 0x16e   : > { %v1941_v4 = vpop.eup %1940  ;;  %v1704_v31 = vmul.f32 1.442695, %v1676_v29  ;;  %v1332_v27 = vadd.f32 %v1331_v3, %v1295_v6 }
 0x16f   : > { %1731 = vst [vmem:[%s2406_s19 + $0x18] sm:$0xff] %v1941_v4  ;;  %v1441_v54 = vpop.f32.mrf.mxu1 }
 0x170   : > { %1942 = vpow2.f32 %v1704_v31  ;;  %v1641_v11 = vsub.f32 %v1332_v27, %v1621_v40  ;;  %v1442_v51 = vadd.f32 %v1441_v54, %v2486_v7 }
 0x172   : > { %v1661_v0 = vmul.f32 %v1641_v11, %v1641_v11 }
 0x173   : > { %v1298_v5 = vpop.f32.mrf.mxu2 }
 0x174   : > { %v1681_v10 = vmul.f32 -0.5, %v1661_v0  ;;  %v1299_v12 = vadd.f32 %v1298_v5, %v1254_v9 }
 0x175   : > { %v1335_v8 = vpop.f32.mrf.mxu3  ;;  %v1564_v20 = vpop.f32.mrf.mxu0 }
 0x176   : > { %v1943_v15 = vpop.eup %1942  ;;  %v1714_v21 = vmul.f32 1.442695, %v1681_v10  ;;  %v1336_v17 = vadd.f32 %v1335_v8, %v1299_v12 }
 0x177   : > { %1736 = vst [vmem:[%s2406_s19 + $0x40] sm:$0xff] %v1943_v15  ;;  %v1601_v24 = vpop.f32.mrf.mxu1 }
 0x178   : > { %1944 = vpow2.f32 %v1714_v21  ;;  %v1646_v63 = vsub.f32 %v1336_v17, %v1621_v40 }
 0x17a   : > { %v1666_v25 = vmul.f32 %v1646_v63, %v1646_v63 }
 0x17b   : > { %v1471_v41 = vpop.f32.mrf.mxu2 }
 0x17c   : > { %v1686_v30 = vmul.f32 -0.5, %v1666_v25  ;;  %v1472_v32 = vadd.f32 %v1471_v41, %v1430_v19 }
 0x17d   : > { %v1513_v44 = vpop.f32.mrf.mxu3  ;;  %v1568_v35 = vpop.f32.mrf.mxu0 }
 0x17e   : > { %v1945_v33 = vpop.eup %1944  ;;  %v1724_v34 = vmul.f32 1.442695, %v1686_v30  ;;  %v1514_v37 = vadd.f32 %v1513_v44, %v1472_v32 }
 0x17f   : > { %1741 = vst [vmem:[%s2406_s19 + $0x68] sm:$0xff] %v1945_v33  ;;  %v1605_v40 = vpop.f32.mrf.mxu1 }
 0x180   : > { %1946 = vpow2.f32 %v1724_v34  ;;  %v1565_v23 = vadd.f32 %v1564_v20, %v1514_v37 }
 0x182   : > { %v1602_v16 = vadd.f32 %v1601_v24, %v1565_v23 }
 0x183   : > { %v1476_v36 = vpop.f32.mrf.mxu2 }
 0x184   : > { %v1477_v59 = vadd.f32 %v1476_v36, %v1434_v13  ;;  %v1632_v38 = vsub.f32 %v1602_v16, %v1622_v26 }
 0x185   : > { %v1519_v45 = vpop.f32.mrf.mxu3  ;;  %v1572_v62 = vpop.f32.mrf.mxu0 }
 0x186   : > { %v1947_v42 = vpop.eup %1946  ;;  %v1652_v48 = vmul.f32 %v1632_v38, %v1632_v38  ;;  %v1520_v28 = vadd.f32 %v1519_v45, %v1477_v59 }
 0x187   : > { %1746 = vst [vmem:[%s2406_s19 + $0x90] sm:$0xff] %v1947_v42  ;;  %v1609_v55 = vpop.f32.mrf.mxu1 }
 0x188   : > { %v1672_v49 = vmul.f32 -0.5, %v1652_v48  ;;  %v1569_v39 = vadd.f32 %v1568_v35, %v1520_v28 }
 0x18a   : > { %v1696_v53 = vmul.f32 1.442695, %v1672_v49  ;;  %v1606_v56 = vadd.f32 %v1605_v40, %v1569_v39 }
 0x18b   : > { %v1481_v52 = vpop.f32.mrf.mxu2 }
 0x18c   : > { %1948 = vpow2.f32 %v1696_v53  ;;  %v1482_v47 = vadd.f32 %v1481_v52, %v1438_v46  ;;  %v1637_v50 = vsub.f32 %v1606_v56, %v1622_v26 }
 0x18d   : > { %v1525_v57 = vpop.f32.mrf.mxu3  ;;  %v1576_v4 = vpop.f32.mrf.mxu0 }
 0x18e   : > { %v1657_v43 = vmul.f32 %v1637_v50, %v1637_v50  ;;  %v1526_v58 = vadd.f32 %v1525_v57, %v1482_v47 }
 0x18f   : > { %v1613_v27 = vpop.f32.mrf.mxu1 }
 0x190   : > { %v1677_v22 = vmul.f32 -0.5, %v1657_v43  ;;  %v1573_v60 = vadd.f32 %v1572_v62, %v1526_v58 }
 0x192   : > { %v1949_v2 = vpop.eup %1948  ;;  %v1706_v29 = vmul.f32 1.442695, %v1677_v22  ;;  %v1610_v18 = vadd.f32 %v1609_v55, %v1573_v60 }
 0x193   : > { %v1486_v1 = vpop.f32.mrf.mxu2  ;;  %1732 = vst [vmem:[%s2406_s19 + $0x20] sm:$0xff] %v1949_v2 }
 0x194   : > { %1950 = vpow2.f32 %v1706_v29  ;;  %v1487_v61 = vadd.f32 %v1486_v1, %v1442_v51  ;;  %v1642_v6 = vsub.f32 %v1610_v18, %v1622_v26 }
 0x195   : > { %v1531_v3 = vpop.f32.mrf.mxu3 }
 0x196   : > { %v1662_v14 = vmul.f32 %v1642_v6, %v1642_v6  ;;  %v1532_v31 = vadd.f32 %v1531_v3, %v1487_v61 }
 0x198   : > { %v1682_v11 = vmul.f32 -0.5, %v1662_v14  ;;  %v1577_v5 = vadd.f32 %v1576_v4, %v1532_v31 }
 0x19a   : > { %v1951_v9 = vpop.eup %1950  ;;  %v1716_v0 = vmul.f32 1.442695, %v1682_v11  ;;  %v1614_v7 = vadd.f32 %v1613_v27, %v1577_v5 }
 0x19b   : > { %1737 = vst [vmem:[%s2406_s19 + $0x48] sm:$0xff] %v1951_v9 }
 0x19c   : > { %1952 = vpow2.f32 %v1716_v0  ;;  %v1647_v54 = vsub.f32 %v1614_v7, %v1622_v26 }
 0x19e   : > { %v1667_v10 = vmul.f32 %v1647_v54, %v1647_v54 }
 0x1a0   : > { %v1687_v12 = vmul.f32 -0.5, %v1667_v10 }
 0x1a2   : > { %v1953_v8 = vpop.eup %1952  ;;  %v1726_v15 = vmul.f32 1.442695, %v1687_v12 }
 0x1a3   : > { %1742 = vst [vmem:[%s2406_s19 + $0x70] sm:$0xff] %v1953_v8 }
 0x1a4   : > { %1954 = vpow2.f32 %v1726_v15 }
 0x1aa   : > { %v1955_v21 = vpop.eup %1954 }
 0x1ab   : > { %1747 = vst [vmem:[%s2406_s19 + $0x98] sm:$0xff] %v1955_v21 }
 0x1ac   : > { %2013 = shalt.err (!%p2010_p8)
}
 0x1ad   : > { %s2057_s9 = smov 640   ;;  %s2058_s10 = smov 40  }
 0x1ae   : > { %1866 = dma.vmem_to_hbm [thread:$0]  (%p2117_p5), %s1763_s27, 2560, %s1765_s28, %s1749_s29, %s2057_s9, %s2057_s9, %s2058_s10  }
 0x1af PF: > { %p1878_p9 = scmp.ge.s32.totalorder %s2052_s15, 2  ;;  %s1779_s11 = sand.u32 1, %s2040_s12  }
 0x1b0   : > { %s1780_s17 = scalar_lea.sflag [#allocation4], %s1779_s11 }
 0x1b1   : > { %p1873_p10 = pnand %p1878_p9, %p2121_p6 }
 0x1b3   : > { %p1874_p11 = pneg %p1873_p10 }
 0x1b5   : > { %2035 = dma.done.wait (%p1874_p11), %s1780_s17, 2560  }
 0x1b6   : > { %2037 = vsyncadd (%p1874_p11), %s1780_s17, 4294964736  ;;  %p14_p12 = scmp.ge.s32.totalorder %s2104_s18, 4   ;;  %s2540_s12 = smov %s2044_s13 }
 0x1b7   : > { %s2541_s13 = smov %s2048_s14  ;;  %s2542_s14 = smov %s2115_s21 }
 0x1b8   : > { %s2543_s15 = smov %s2104_s18  ;;  %16 = sbr.rel (!%p14_p12) target bundleno = 4 (0x4), region = 72 }
 0x1bd   :  { %1786 = vsyncpa [#allocation3], 1 }
 0x1be   :  { %1788 = vsyncpa [#allocation3 + $0x1], 1 }
 0x1bf   :  { %1789 = vsyncpa [#allocation4], 1 }
 0x1c0   :  { %1791 = vsyncpa [#allocation4 + $0x1], 1 }

</bundles_post_ra>
